<compile_context>
chip_gen: v7x
topology: tpu7x:2x2x1
jax: 0.10.0
libtpu: 0.0.40
codegen_flags: <defaults>
</compile_context>

<pallas_src>
import functools

import jax
import jax.numpy as jnp
import numpy as np
from jax.experimental import pallas as pl
from jax.experimental.pallas import tpu as pltpu

_PAD = 16  # aligned zero-pad rows above/below the folded image stack in scratch


# ----------------------------------------------------------------------------
# Pallas kernel: [prev-layer BN affine(+ReLU)] -> 3x3 conv -> (y, packed BN stats)
# ----------------------------------------------------------------------------
def _conv3x3_bn_stats_kernel(x_ref, bw_ref, b_ref, isc_ref, ish_ref, sel_ref,
                             y_ref, stat_ref, xpad_ref, *,
                             NB, H, W, Cin, Cout, relu_input):
    """One grid step = NB images folded into the matmul M dimension.

    x_ref:    (NB, H, W*Cin)      bf16  input block (channels interleaved on lanes)
    bw_ref:   (3, W*Cin, W*Cout)  bf16  banded weights, one per vertical tap
    b_ref:    (1, W*Cout)         f32   conv bias, tiled over W
    isc_ref:  (1, W*Cin)          f32   folded-BN scale of previous layer (tiled)
    ish_ref:  (1, W*Cin)          f32   folded-BN shift of previous layer (tiled)
    sel_ref:  (W*Cout, Cout)      bf16  0/1 channel-selection matrix for stats
    y_ref:    (NB, H, W*Cout)     bf16  conv output (pre-BN, bias included)
    stat_ref: (1, 2, Cout)        f32   packed [channel sum; channel sum-of-squares]
    xpad_ref: (NB*H + 2*_PAD, W*Cin) bf16 persistent padded-input scratch
    """
    M = NB * H
    K = W * Cin
    Nn = W * Cout

    # ---- previous layer's BN affine (+ReLU) fused into this conv's input (f32) ----
    x = x_ref[...].reshape(M, K).astype(jnp.float32)     # free reshape (merge leading dims)
    x = x * isc_ref[0] + ish_ref[0]
    if relu_input:
        x = jnp.maximum(x, 0.0)

    # ---- persistent padded scratch: zero blocks + aligned store of the bf16 input ----
    # Zero blocks are written unconditionally (2 tiny aligned stores) so the kernel
    # stays correct even if the "parallel" grid axis is split across TensorCores.
    xpad_ref[pl.ds(0, _PAD), :] = jnp.zeros((_PAD, K), jnp.bfloat16)
    xpad_ref[pl.ds(_PAD + M, _PAD), :] = jnp.zeros((_PAD, K), jnp.bfloat16)
    xpad_ref[pl.ds(_PAD, M), :] = x.astype(jnp.bfloat16)

    # ---- 3x3 conv = 3 MXU matmuls (vertical taps) with M = NB*H rows ----
    # c0: contribution of the row above, c1: same row, c2: the row below.
    c0 = jnp.dot(xpad_ref[pl.ds(_PAD - 1, M), :], bw_ref[0],
                 preferred_element_type=jnp.float32)
    c1 = jnp.dot(xpad_ref[pl.ds(_PAD, M), :], bw_ref[1],
                 preferred_element_type=jnp.float32)
    c2 = jnp.dot(xpad_ref[pl.ds(_PAD + 1, M), :], bw_ref[2],
                 preferred_element_type=jnp.float32)

    # Mask cross-image leakage at each image's first/last row (batch folded into M).
    row = jax.lax.broadcasted_iota(jnp.int32, (NB, H, 1), 1).reshape(M, 1)
    m_top = (row != 0).astype(jnp.float32)
    m_bot = (row != H - 1).astype(jnp.float32)
    acc0 = c1 + c0 * m_top + c2 * m_bot                  # pre-bias conv output (f32)

    # ---- BN batch statistics: XLU row-reduce first, then one tiny selection matmul ----
    rsum = jnp.sum(acc0, axis=0, keepdims=True)          # (1, W*Cout)
    rssq = jnp.sum(acc0 * acc0, axis=0, keepdims=True)   # (1, W*Cout)
    both = jnp.concatenate([rsum, rssq], axis=0)         # (2, W*Cout)
    sel = sel_ref[...].astype(jnp.float32)               # 0/1, exact in bf16
    stat_ref[0] = jnp.dot(both, sel, preferred_element_type=jnp.float32)  # (2, Cout)

    # ---- bias + lane-dense store (last dim W*Cout = 128 here -> unmasked vst) ----
    y = acc0 + b_ref[0]
    y_ref[...] = y.reshape(NB, H, Nn).astype(y_ref.dtype)


# ----------------------------------------------------------------------------
# Wrapper-side weight plumbing
# ----------------------------------------------------------------------------
def build_banded_weights(w, W):
    """w: (3, 3, Cin, Cout) -> B: (3, W*Cin, W*Cout) with
    B[ky, xi*Cin+ci, xo*Cout+co] = w[ky, xi-xo+1, ci, co] if 0 <= xi-xo+1 <= 2 else 0.
    Horizontal zero-padding of the conv is encoded by the band structure.
    # TODO(synk): O(W^2*Cin*Cout) -- restrict the band to W-tiles for large images.
    """
    _, _, Cin, Cout = w.shape
    xi = jnp.arange(W)[:, None]
    xo = jnp.arange(W)[None, :]
    kx = xi - xo + 1
    valid = ((kx >= 0) & (kx <= 2)).astype(w.dtype)
    kx_c = jnp.clip(kx, 0, 2)
    taps = w[:, kx_c] * valid[None, :, :, None, None]    # (3, W, W, Cin, Cout)
    return jnp.transpose(taps, (0, 1, 3, 2, 4)).reshape(3, W * Cin, W * Cout)


def _padded_bytes(shape, dtype):
    """Bytes of one VMEM buffer after (sublane, lane) tile padding."""
    itemsize = np.dtype(dtype).itemsize
    sub = 8 * max(1, 4 // itemsize)                       # 8 for f32, 16 for bf16
    s = list(shape)
    s[-1] = -(-s[-1] // 128) * 128
    if len(s) >= 2:
        s[-2] = -(-s[-2] // sub) * sub
    return int(np.prod(s)) * itemsize


def _pick_batch_block(N, H, max_rows=256):
    """Largest divisor NB of N with NB*H <= max_rows (fold batch into matmul M)."""
    nb = 1
    for d in range(1, N + 1):
        if N % d == 0 and d * H <= max_rows:
            nb = d
    return nb


# ----------------------------------------------------------------------------
# Pallas wrapper (activations kept as (N, H, W*C) bf16 in HBM)
# ----------------------------------------------------------------------------
def conv3x3_bn_stats_pallas(x, bw, bias, in_scale, in_shift, relu_input, *,
                            NB, H, W, Cin, Cout):
    """x: (N, H, W*Cin) bf16 -> (y (N, H, W*Cout) bf16, stats (N//NB, 2, Cout) f32)."""
    N = x.shape[0]
    K, Nn = W * Cin, W * Cout
    assert x.shape == (N, H, K) and N % NB == 0
    nblk = N // NB
    M = NB * H

    b_t = jnp.tile(bias.astype(jnp.float32), W).reshape(1, Nn)
    isc_t = jnp.tile(in_scale.astype(jnp.float32), W).reshape(1, K)
    ish_t = jnp.tile(in_shift.astype(jnp.float32), W).reshape(1, K)
    sel = (jnp.arange(Nn)[:, None] % Cout
           == jnp.arange(Cout)[None, :]).astype(jnp.bfloat16)       # (W*Cout, Cout)

    kernel = functools.partial(_conv3x3_bn_stats_kernel, NB=NB, H=H, W=W,
                               Cin=Cin, Cout=Cout, relu_input=relu_input)

    # VMEM budget: tile-padded sizes; double-buffer only grid-varying blocks,
    # count grid-invariant parameter blocks once; + headroom for compiler temps.
    varying = 2 * (_padded_bytes((NB, H, K), jnp.bfloat16)
                   + _padded_bytes((NB, H, Nn), jnp.bfloat16)
                   + _padded_bytes((1, 2, Cout), jnp.float32))
    invariant = (_padded_bytes((3, K, Nn), jnp.bfloat16)
                 + _padded_bytes((1, Nn), jnp.float32)
                 + 2 * _padded_bytes((1, K), jnp.float32)
                 + _padded_bytes((Nn, Cout), jnp.bfloat16))
    scratch_b = _padded_bytes((M + 2 * _PAD, K), jnp.bfloat16)
    vmem_limit = int(varying + invariant + scratch_b + (4 << 20))

    return pl.pallas_call(
        kernel,
        out_shape=(jax.ShapeDtypeStruct((N, H, Nn), jnp.bfloat16),
                   jax.ShapeDtypeStruct((nblk, 2, Cout), jnp.float32)),
        grid_spec=pltpu.PrefetchScalarGridSpec(
            num_scalar_prefetch=0,
            grid=(nblk,),
            in_specs=[
                pl.BlockSpec((NB, H, K), lambda n: (n, 0, 0)),
                pl.BlockSpec((3, K, Nn), lambda n: (0, 0, 0)),
                pl.BlockSpec((1, Nn), lambda n: (0, 0)),
                pl.BlockSpec((1, K), lambda n: (0, 0)),
                pl.BlockSpec((1, K), lambda n: (0, 0)),
                pl.BlockSpec((Nn, Cout), lambda n: (0, 0)),
            ],
            out_specs=[
                pl.BlockSpec((NB, H, Nn), lambda n: (n, 0, 0)),
                pl.BlockSpec((1, 2, Cout), lambda n: (n, 0, 0)),
            ],
            scratch_shapes=[pltpu.VMEM((M + 2 * _PAD, K), jnp.bfloat16)],
        ),
        compiler_params=pltpu.CompilerParams(
            dimension_semantics=("parallel",),
            vmem_limit_bytes=vmem_limit),
    )(x, bw, b_t, isc_t, ish_t, sel)


# ----------------------------------------------------------------------------
# unetConv2 forward: n=2 x (Conv -> BN(training batch stats) -> ReLU)
# ----------------------------------------------------------------------------
def unet_conv2_forward(x_nchw, params, eps=1e-5):
    # NCHW (PyTorch) -> lane-flattened (N, H, W*C) bf16 activations in HBM.
    x = jnp.transpose(x_nchw, (0, 2, 3, 1))              # NHWC
    N, H, W, cin = x.shape
    x = x.reshape(N, H, W * cin).astype(jnp.bfloat16)

    NB = _pick_batch_block(N, H)                          # fold batch into matmul M

    # Identity "previous-layer BN" for the first conv (exact no-op).
    in_scale = jnp.ones((cin,), jnp.float32)
    in_shift = jnp.zeros((cin,), jnp.float32)
    relu_in = False

    for p in params:
        cout = p["b"].shape[0]
        bw = build_banded_weights(p["w"], W).astype(jnp.bfloat16)
        y, stats = conv3x3_bn_stats_pallas(x, bw, p["b"], in_scale, in_shift,
                                           relu_in, NB=NB, H=H, W=W,
                                           Cin=cin, Cout=cout)
        # Training-mode BatchNorm2d: biased batch statistics over (N, H, W).
        # Stats were accumulated on the pre-bias conv output (bias re-added here),
        # which keeps the E[x^2]-E[x]^2 cancellation mild.
        cnt = N * H * W
        s = jnp.sum(stats[:, 0, :], axis=0)
        q = jnp.sum(stats[:, 1, :], axis=0)
        mean0 = s / cnt
        var = jnp.maximum(q / cnt - mean0 * mean0, 0.0)
        mean = mean0 + p["b"]
        inv_std = jax.lax.rsqrt(var + eps)
        scale = p["gamma"] * inv_std
        shift = p["beta"] - mean * scale

        x = y                                             # pre-BN activations (bf16)
        in_scale, in_shift, relu_in = scale, shift, True
        cin = cout

    # LAST layer's BN affine + ReLU: left to XLA so it fuses with the final
    # reshape/transpose (per perf review -- removes one kernel launch at tiny
    # shapes).  Earlier layers' BN+ReLU were fused into the next Pallas conv.
    y = x.reshape(N, H, W, cin).astype(jnp.float32)
    y = jnp.maximum(y * in_scale[None, None, None, :]
                    + in_shift[None, None, None, :], 0.0)
    return jnp.transpose(y, (0, 3, 1, 2))                 # back to NCHW


# ----------------------------------------------------------------------------
# Deterministic parameter init (mirrors weights_init_kaiming)
# ----------------------------------------------------------------------------
def init_params(key, in_size, out_size, n=2, ks=3):
    params = []
    cin = in_size
    for _ in range(n):
        key, kw, kb, kg = jax.random.split(key, 4)
        fan_in = cin * ks * ks
        w = jax.random.normal(kw, (ks, ks, cin, out_size), jnp.float32) * np.sqrt(2.0 / fan_in)
        bound = 1.0 / np.sqrt(fan_in)
        b = jax.random.uniform(kb, (out_size,), jnp.float32, -bound, bound)
        gamma = 1.0 + 0.02 * jax.random.normal(kg, (out_size,), jnp.float32)
        beta = jnp.zeros((out_size,), jnp.float32)
        params.append({"w": w, "b": b, "gamma": gamma, "beta": beta})
        cin = out_size
    return params


# ----------------------------------------------------------------------------
# Pure-JAX f32 reference for verification
# ----------------------------------------------------------------------------
def reference_forward(x_nchw, params, eps=1e-5):
    x = x_nchw.astype(jnp.float32)
    for p in params:
        w_oihw = jnp.transpose(p["w"], (3, 2, 0, 1))
        y = jax.lax.conv_general_dilated(
            x, w_oihw, window_strides=(1, 1), padding=((1, 1), (1, 1)),
            dimension_numbers=("NCHW", "OIHW", "NCHW"))
        y = y + p["b"][None, :, None, None]
        mean = jnp.mean(y, axis=(0, 2, 3), keepdims=True)
        var = jnp.var(y, axis=(0, 2, 3), keepdims=True)
        y = (y - mean) / jnp.sqrt(var + eps)
        y = y * p["gamma"][None, :, None, None] + p["beta"][None, :, None, None]
        x = jnp.maximum(y, 0.0)
    return x


if __name__ == "__main__":
    key = jax.random.PRNGKey(0)
    k_x, k_p = jax.random.split(key)

    N, Cin, H, W = 2, 4, 16, 16
    Cout = 8
    x = jax.random.normal(k_x, (N, Cin, H, W), jnp.float32)
    params = init_params(k_p, in_size=Cin, out_size=Cout, n=2, ks=3)

    out = jax.jit(unet_conv2_forward)(x, params)
    out = jax.block_until_ready(out)

    ref = jax.block_until_ready(reference_forward(x, params))
    assert out.shape == (N, Cout, H, W), out.shape
    # bf16 activations/weights on the MXU with f32 accumulation/BN math: compare
    # against the pure-f32 reference with a bf16-appropriate tolerance.
    np.testing.assert_allclose(np.asarray(out, np.float32), np.asarray(ref),
                               rtol=5e-2, atol=5e-2)

    print("KERNEL_OK")
</pallas_src>

<mosaic_0001>
module attributes {stable_mosaic.version = 11 : i64} {
  func.func @_conv3x3_bn_stats_kernel(%arg0: i32, %arg1: memref<2x16x64xbf16, #tpu.memory_space<vmem>>, %arg2: memref<3x64x128xbf16, #tpu.memory_space<vmem>>, %arg3: memref<1x128xf32, #tpu.memory_space<vmem>>, %arg4: memref<1x64xf32, #tpu.memory_space<vmem>>, %arg5: memref<1x64xf32, #tpu.memory_space<vmem>>, %arg6: memref<128x8xbf16, #tpu.memory_space<vmem>>, %arg7: memref<2x16x128xbf16, #tpu.memory_space<vmem>>, %arg8: memref<1x2x8xf32, #tpu.memory_space<vmem>>, %arg9: memref<64x64xbf16, #tpu.memory_space<vmem>>) attributes {dimension_semantics = [#tpu.dimension_semantics<parallel>], iteration_bounds = array<i64: 1>, scalar_prefetch = 0 : i64, scratch_operands = 1 : i64, tpu.core_type = #tpu.core_type<tc>, window_params = [{transform_indices = @transform_0, window_bounds = array<i64: 2, 16, 64>}, {pipeline_mode = #tpu.pipeline_mode<synchronous>, transform_indices = @transform_1, window_bounds = array<i64: 3, 64, 128>}, {pipeline_mode = #tpu.pipeline_mode<synchronous>, transform_indices = @transform_2, window_bounds = array<i64: 1, 128>}, {pipeline_mode = #tpu.pipeline_mode<synchronous>, transform_indices = @transform_3, window_bounds = array<i64: 1, 64>}, {pipeline_mode = #tpu.pipeline_mode<synchronous>, transform_indices = @transform_4, window_bounds = array<i64: 1, 64>}, {pipeline_mode = #tpu.pipeline_mode<synchronous>, transform_indices = @transform_5, window_bounds = array<i64: 128, 8>}, {transform_indices = @transform_6, window_bounds = array<i64: 2, 16, 128>}, {transform_indices = @transform_7, window_bounds = array<i64: 1, 2, 8>}]} {
    %c0 = arith.constant 0 : index
    %c0_0 = arith.constant 0 : index
    %c0_1 = arith.constant 0 : index
    %0 = vector.load %arg1[%c0, %c0_0, %c0_1] : memref<2x16x64xbf16, #tpu.memory_space<vmem>>, vector<2x16x64xbf16>
    %1 = vector.shape_cast %0 : vector<2x16x64xbf16> to vector<32x64xbf16>
    %2 = arith.extf %1 : vector<32x64xbf16> to vector<32x64xf32>
    %c0_2 = arith.constant 0 : index
    %c0_3 = arith.constant 0 : index
    %3 = vector.load %arg4[%c0_2, %c0_3] : memref<1x64xf32, #tpu.memory_space<vmem>>, vector<1x64xf32>
    %4 = vector.shape_cast %3 : vector<1x64xf32> to vector<64xf32>
    %5 = vector.shape_cast %4 : vector<64xf32> to vector<1x64xf32>
    %6 = vector.broadcast %5 : vector<1x64xf32> to vector<32x64xf32>
    %7 = arith.mulf %2, %6 : vector<32x64xf32>
    %c0_4 = arith.constant 0 : index
    %c0_5 = arith.constant 0 : index
    %8 = vector.load %arg5[%c0_4, %c0_5] : memref<1x64xf32, #tpu.memory_space<vmem>>, vector<1x64xf32>
    %9 = vector.shape_cast %8 : vector<1x64xf32> to vector<64xf32>
    %10 = vector.shape_cast %9 : vector<64xf32> to vector<1x64xf32>
    %11 = vector.broadcast %10 : vector<1x64xf32> to vector<32x64xf32>
    %12 = arith.addf %7, %11 : vector<32x64xf32>
    %cst = arith.constant 0.000000e+00 : bf16
    %13 = vector.broadcast %cst : bf16 to vector<16x64xbf16>
    %c0_6 = arith.constant 0 : index
    %c0_7 = arith.constant 0 : index
    %14 = vector.load %arg9[%c0_6, %c0_7] : memref<64x64xbf16, #tpu.memory_space<vmem>>, vector<16x64xbf16>
    tpu.vector_store %arg9[%c0_6, %c0_7], %13 {strides = array<i32>} : memref<64x64xbf16, #tpu.memory_space<vmem>>, vector<16x64xbf16>,
    %cst_8 = arith.constant 0.000000e+00 : bf16
    %15 = vector.broadcast %cst_8 : bf16 to vector<16x64xbf16>
    %c48 = arith.constant 48 : index
    %c0_9 = arith.constant 0 : index
    %16 = vector.load %arg9[%c48, %c0_9] : memref<64x64xbf16, #tpu.memory_space<vmem>>, vector<16x64xbf16>
    tpu.vector_store %arg9[%c48, %c0_9], %15 {strides = array<i32>} : memref<64x64xbf16, #tpu.memory_space<vmem>>, vector<16x64xbf16>,
    %17 = arith.truncf %12 : vector<32x64xf32> to vector<32x64xbf16>
    %c16 = arith.constant 16 : index
    %c0_10 = arith.constant 0 : index
    %18 = vector.load %arg9[%c16, %c0_10] : memref<64x64xbf16, #tpu.memory_space<vmem>>, vector<32x64xbf16>
    tpu.vector_store %arg9[%c16, %c0_10], %17 {strides = array<i32>} : memref<64x64xbf16, #tpu.memory_space<vmem>>, vector<32x64xbf16>,
    %c15 = arith.constant 15 : index
    %c0_11 = arith.constant 0 : index
    %19 = vector.load %arg9[%c15, %c0_11] : memref<64x64xbf16, #tpu.memory_space<vmem>>, vector<32x64xbf16>
    %c0_12 = arith.constant 0 : index
    %c0_13 = arith.constant 0 : index
    %c0_14 = arith.constant 0 : index
    %20 = vector.load %arg2[%c0_12, %c0_13, %c0_14] : memref<3x64x128xbf16, #tpu.memory_space<vmem>>, vector<1x64x128xbf16>
    %21 = vector.shape_cast %20 : vector<1x64x128xbf16> to vector<64x128xbf16>
    %cst_15 = arith.constant dense<0.000000e+00> : vector<32x128xf32>
    %22 = tpu.matmul %19, %21, %cst_15 {dimension_numbers = #tpu.dot_dimension_numbers<[1], [0], [0], [1], [0, 0, 1, 1], [], []>} : vector<32x64xbf16>, vector<64x128xbf16>, vector<32x128xf32> -> vector<32x128xf32>
    %c16_16 = arith.constant 16 : index
    %c0_17 = arith.constant 0 : index
    %23 = vector.load %arg9[%c16_16, %c0_17] : memref<64x64xbf16, #tpu.memory_space<vmem>>, vector<32x64xbf16>
    %c1 = arith.constant 1 : index
    %c0_18 = arith.constant 0 : index
    %c0_19 = arith.constant 0 : index
    %24 = vector.load %arg2[%c1, %c0_18, %c0_19] : memref<3x64x128xbf16, #tpu.memory_space<vmem>>, vector<1x64x128xbf16>
    %25 = vector.shape_cast %24 : vector<1x64x128xbf16> to vector<64x128xbf16>
    %cst_20 = arith.constant dense<0.000000e+00> : vector<32x128xf32>
    %26 = tpu.matmul %23, %25, %cst_20 {dimension_numbers = #tpu.dot_dimension_numbers<[1], [0], [0], [1], [0, 0, 1, 1], [], []>} : vector<32x64xbf16>, vector<64x128xbf16>, vector<32x128xf32> -> vector<32x128xf32>
    %c17 = arith.constant 17 : index
    %c0_21 = arith.constant 0 : index
    %27 = vector.load %arg9[%c17, %c0_21] : memref<64x64xbf16, #tpu.memory_space<vmem>>, vector<32x64xbf16>
    %c2 = arith.constant 2 : index
    %c0_22 = arith.constant 0 : index
    %c0_23 = arith.constant 0 : index
    %28 = vector.load %arg2[%c2, %c0_22, %c0_23] : memref<3x64x128xbf16, #tpu.memory_space<vmem>>, vector<1x64x128xbf16>
    %29 = vector.shape_cast %28 : vector<1x64x128xbf16> to vector<64x128xbf16>
    %cst_24 = arith.constant dense<0.000000e+00> : vector<32x128xf32>
    %30 = tpu.matmul %27, %29, %cst_24 {dimension_numbers = #tpu.dot_dimension_numbers<[1], [0], [0], [1], [0, 0, 1, 1], [], []>} : vector<32x64xbf16>, vector<64x128xbf16>, vector<32x128xf32> -> vector<32x128xf32>
    %31 = tpu.iota {dimensions = array<i32: 1>} : vector<2x16x1xi32>
    %32 = vector.shape_cast %31 : vector<2x16x1xi32> to vector<32x1xi32>
    %c0_i32 = arith.constant 0 : i32
    %33 = vector.broadcast %c0_i32 : i32 to vector<32x1xi32>
    %34 = arith.cmpi ne, %32, %33 : vector<32x1xi32>
    %35 = arith.extui %34 : vector<32x1xi1> to vector<32x1xi32>
    %36 = arith.sitofp %35 : vector<32x1xi32> to vector<32x1xf32>
    %c15_i32 = arith.constant 15 : i32
    %37 = vector.broadcast %c15_i32 : i32 to vector<32x1xi32>
    %38 = arith.cmpi ne, %32, %37 : vector<32x1xi32>
    %39 = arith.extui %38 : vector<32x1xi1> to vector<32x1xi32>
    %40 = arith.sitofp %39 : vector<32x1xi32> to vector<32x1xf32>
    %41 = vector.broadcast %36 : vector<32x1xf32> to vector<32x128xf32>
    %42 = arith.mulf %22, %41 : vector<32x128xf32>
    %43 = arith.addf %26, %42 : vector<32x128xf32>
    %44 = vector.broadcast %40 : vector<32x1xf32> to vector<32x128xf32>
    %45 = arith.mulf %30, %44 : vector<32x128xf32>
    %46 = arith.addf %43, %45 : vector<32x128xf32>
    %cst_25 = arith.constant dense<0.000000e+00> : vector<128xf32>
    %47 = vector.multi_reduction <add>, %46, %cst_25 [0] : vector<32x128xf32> to vector<128xf32>
    %48 = vector.shape_cast %47 : vector<128xf32> to vector<1x128xf32>
    %49 = arith.mulf %46, %46 : vector<32x128xf32>
    %cst_26 = arith.constant dense<0.000000e+00> : vector<128xf32>
    %50 = vector.multi_reduction <add>, %49, %cst_26 [0] : vector<32x128xf32> to vector<128xf32>
    %51 = vector.shape_cast %50 : vector<128xf32> to vector<1x128xf32>
    %52 = tpu.concatenate %48, %51 in 0 : vector<1x128xf32>, vector<1x128xf32> -> vector<2x128xf32>
    %c0_27 = arith.constant 0 : index
    %c0_28 = arith.constant 0 : index
    %53 = vector.load %arg6[%c0_27, %c0_28] : memref<128x8xbf16, #tpu.memory_space<vmem>>, vector<128x8xbf16>
    %54 = arith.extf %53 : vector<128x8xbf16> to vector<128x8xf32>
    %cst_29 = arith.constant dense<0.000000e+00> : vector<2x8xf32>
    %55 = tpu.matmul %52, %54, %cst_29 {dimension_numbers = #tpu.dot_dimension_numbers<[1], [0], [0], [1], [0, 0, 1, 1], [], []>} : vector<2x128xf32>, vector<128x8xf32>, vector<2x8xf32> -> vector<2x8xf32>
    %c0_30 = arith.constant 0 : index
    %c0_31 = arith.constant 0 : index
    %c0_32 = arith.constant 0 : index
    %56 = vector.load %arg8[%c0_30, %c0_31, %c0_32] : memref<1x2x8xf32, #tpu.memory_space<vmem>>, vector<1x2x8xf32>
    %57 = vector.shape_cast %56 : vector<1x2x8xf32> to vector<2x8xf32>
    %58 = vector.shape_cast %55 : vector<2x8xf32> to vector<1x2x8xf32>
    tpu.vector_store %arg8[%c0_30, %c0_31, %c0_32], %58 {strides = array<i32>} : memref<1x2x8xf32, #tpu.memory_space<vmem>>, vector<1x2x8xf32>,
    %c0_33 = arith.constant 0 : index
    %c0_34 = arith.constant 0 : index
    %59 = vector.load %arg3[%c0_33, %c0_34] : memref<1x128xf32, #tpu.memory_space<vmem>>, vector<1x128xf32>
    %60 = vector.shape_cast %59 : vector<1x128xf32> to vector<128xf32>
    %61 = vector.shape_cast %60 : vector<128xf32> to vector<1x128xf32>
    %62 = vector.broadcast %61 : vector<1x128xf32> to vector<32x128xf32>
    %63 = arith.addf %46, %62 : vector<32x128xf32>
    %64 = vector.shape_cast %63 : vector<32x128xf32> to vector<2x16x128xf32>
    %65 = arith.truncf %64 : vector<2x16x128xf32> to vector<2x16x128xbf16>
    %c0_35 = arith.constant 0 : index
    %c0_36 = arith.constant 0 : index
    %c0_37 = arith.constant 0 : index
    %66 = vector.load %arg7[%c0_35, %c0_36, %c0_37] : memref<2x16x128xbf16, #tpu.memory_space<vmem>>, vector<2x16x128xbf16>
    tpu.vector_store %arg7[%c0_35, %c0_36, %c0_37], %65 {strides = array<i32>} : memref<2x16x128xbf16, #tpu.memory_space<vmem>>, vector<2x16x128xbf16>,
    return
  }
  func.func @transform_0(%arg0: i32) -> (i32, i32, i32) {
    %c0_i32 = arith.constant 0 : i32
    %c0_i32_0 = arith.constant 0 : i32
    %c0_i32_1 = arith.constant 0 : i32
    return %arg0, %c0_i32, %c0_i32_0 : i32, i32, i32
  }
  func.func @transform_1(%arg0: i32) -> (i32, i32, i32) {
    %c0_i32 = arith.constant 0 : i32
    %c0_i32_0 = arith.constant 0 : i32
    %c0_i32_1 = arith.constant 0 : i32
    %c0_i32_2 = arith.constant 0 : i32
    return %c0_i32, %c0_i32_0, %c0_i32_1 : i32, i32, i32
  }
  func.func @transform_2(%arg0: i32) -> (i32, i32) {
    %c0_i32 = arith.constant 0 : i32
    %c0_i32_0 = arith.constant 0 : i32
    %c0_i32_1 = arith.constant 0 : i32
    return %c0_i32, %c0_i32_0 : i32, i32
  }
  func.func @transform_3(%arg0: i32) -> (i32, i32) {
    %c0_i32 = arith.constant 0 : i32
    %c0_i32_0 = arith.constant 0 : i32
    %c0_i32_1 = arith.constant 0 : i32
    return %c0_i32, %c0_i32_0 : i32, i32
  }
  func.func @transform_4(%arg0: i32) -> (i32, i32) {
    %c0_i32 = arith.constant 0 : i32
    %c0_i32_0 = arith.constant 0 : i32
    %c0_i32_1 = arith.constant 0 : i32
    return %c0_i32, %c0_i32_0 : i32, i32
  }
  func.func @transform_5(%arg0: i32) -> (i32, i32) {
    %c0_i32 = arith.constant 0 : i32
    %c0_i32_0 = arith.constant 0 : i32
    %c0_i32_1 = arith.constant 0 : i32
    return %c0_i32, %c0_i32_0 : i32, i32
  }
  func.func @transform_6(%arg0: i32) -> (i32, i32, i32) {
    %c0_i32 = arith.constant 0 : i32
    %c0_i32_0 = arith.constant 0 : i32
    %c0_i32_1 = arith.constant 0 : i32
    return %arg0, %c0_i32, %c0_i32_0 : i32, i32, i32
  }
  func.func @transform_7(%arg0: i32) -> (i32, i32, i32) {
    %c0_i32 = arith.constant 0 : i32
    %c0_i32_0 = arith.constant 0 : i32
    %c0_i32_1 = arith.constant 0 : i32
    return %arg0, %c0_i32, %c0_i32_0 : i32, i32, i32
  }
}

module attributes {stable_mosaic.version = 11 : i64} {
  func.func @_conv3x3_bn_stats_kernel(%arg0: i32, %arg1: memref<2x16x128xbf16, #tpu.memory_space<vmem>>, %arg2: memref<3x128x128xbf16, #tpu.memory_space<vmem>>, %arg3: memref<1x128xf32, #tpu.memory_space<vmem>>, %arg4: memref<1x128xf32, #tpu.memory_space<vmem>>, %arg5: memref<1x128xf32, #tpu.memory_space<vmem>>, %arg6: memref<128x8xbf16, #tpu.memory_space<vmem>>, %arg7: memref<2x16x128xbf16, #tpu.memory_space<vmem>>, %arg8: memref<1x2x8xf32, #tpu.memory_space<vmem>>, %arg9: memref<64x128xbf16, #tpu.memory_space<vmem>>) attributes {dimension_semantics = [#tpu.dimension_semantics<parallel>], iteration_bounds = array<i64: 1>, scalar_prefetch = 0 : i64, scratch_operands = 1 : i64, tpu.core_type = #tpu.core_type<tc>, window_params = [{transform_indices = @transform_0, window_bounds = array<i64: 2, 16, 128>}, {pipeline_mode = #tpu.pipeline_mode<synchronous>, transform_indices = @transform_1, window_bounds = array<i64: 3, 128, 128>}, {pipeline_mode = #tpu.pipeline_mode<synchronous>, transform_indices = @transform_2, window_bounds = array<i64: 1, 128>}, {pipeline_mode = #tpu.pipeline_mode<synchronous>, transform_indices = @transform_3, window_bounds = array<i64: 1, 128>}, {pipeline_mode = #tpu.pipeline_mode<synchronous>, transform_indices = @transform_4, window_bounds = array<i64: 1, 128>}, {pipeline_mode = #tpu.pipeline_mode<synchronous>, transform_indices = @transform_5, window_bounds = array<i64: 128, 8>}, {transform_indices = @transform_6, window_bounds = array<i64: 2, 16, 128>}, {transform_indices = @transform_7, window_bounds = array<i64: 1, 2, 8>}]} {
    %c0 = arith.constant 0 : index
    %c0_0 = arith.constant 0 : index
    %c0_1 = arith.constant 0 : index
    %0 = vector.load %arg1[%c0, %c0_0, %c0_1] : memref<2x16x128xbf16, #tpu.memory_space<vmem>>, vector<2x16x128xbf16>
    %1 = vector.shape_cast %0 : vector<2x16x128xbf16> to vector<32x128xbf16>
    %2 = arith.extf %1 : vector<32x128xbf16> to vector<32x128xf32>
    %c0_2 = arith.constant 0 : index
    %c0_3 = arith.constant 0 : index
    %3 = vector.load %arg4[%c0_2, %c0_3] : memref<1x128xf32, #tpu.memory_space<vmem>>, vector<1x128xf32>
    %4 = vector.shape_cast %3 : vector<1x128xf32> to vector<128xf32>
    %5 = vector.shape_cast %4 : vector<128xf32> to vector<1x128xf32>
    %6 = vector.broadcast %5 : vector<1x128xf32> to vector<32x128xf32>
    %7 = arith.mulf %2, %6 : vector<32x128xf32>
    %c0_4 = arith.constant 0 : index
    %c0_5 = arith.constant 0 : index
    %8 = vector.load %arg5[%c0_4, %c0_5] : memref<1x128xf32, #tpu.memory_space<vmem>>, vector<1x128xf32>
    %9 = vector.shape_cast %8 : vector<1x128xf32> to vector<128xf32>
    %10 = vector.shape_cast %9 : vector<128xf32> to vector<1x128xf32>
    %11 = vector.broadcast %10 : vector<1x128xf32> to vector<32x128xf32>
    %12 = arith.addf %7, %11 : vector<32x128xf32>
    %cst = arith.constant 0.000000e+00 : f32
    %13 = vector.broadcast %cst : f32 to vector<32x128xf32>
    %14 = arith.maximumf %12, %13 : vector<32x128xf32>
    %cst_6 = arith.constant 0.000000e+00 : bf16
    %15 = vector.broadcast %cst_6 : bf16 to vector<16x128xbf16>
    %c0_7 = arith.constant 0 : index
    %c0_8 = arith.constant 0 : index
    %16 = vector.load %arg9[%c0_7, %c0_8] : memref<64x128xbf16, #tpu.memory_space<vmem>>, vector<16x128xbf16>
    tpu.vector_store %arg9[%c0_7, %c0_8], %15 {strides = array<i32>} : memref<64x128xbf16, #tpu.memory_space<vmem>>, vector<16x128xbf16>,
    %cst_9 = arith.constant 0.000000e+00 : bf16
    %17 = vector.broadcast %cst_9 : bf16 to vector<16x128xbf16>
    %c48 = arith.constant 48 : index
    %c0_10 = arith.constant 0 : index
    %18 = vector.load %arg9[%c48, %c0_10] : memref<64x128xbf16, #tpu.memory_space<vmem>>, vector<16x128xbf16>
    tpu.vector_store %arg9[%c48, %c0_10], %17 {strides = array<i32>} : memref<64x128xbf16, #tpu.memory_space<vmem>>, vector<16x128xbf16>,
    %19 = arith.truncf %14 : vector<32x128xf32> to vector<32x128xbf16>
    %c16 = arith.constant 16 : index
    %c0_11 = arith.constant 0 : index
    %20 = vector.load %arg9[%c16, %c0_11] : memref<64x128xbf16, #tpu.memory_space<vmem>>, vector<32x128xbf16>
    tpu.vector_store %arg9[%c16, %c0_11], %19 {strides = array<i32>} : memref<64x128xbf16, #tpu.memory_space<vmem>>, vector<32x128xbf16>,
    %c15 = arith.constant 15 : index
    %c0_12 = arith.constant 0 : index
    %21 = vector.load %arg9[%c15, %c0_12] : memref<64x128xbf16, #tpu.memory_space<vmem>>, vector<32x128xbf16>
    %c0_13 = arith.constant 0 : index
    %c0_14 = arith.constant 0 : index
    %c0_15 = arith.constant 0 : index
    %22 = vector.load %arg2[%c0_13, %c0_14, %c0_15] : memref<3x128x128xbf16, #tpu.memory_space<vmem>>, vector<1x128x128xbf16>
    %23 = vector.shape_cast %22 : vector<1x128x128xbf16> to vector<128x128xbf16>
    %cst_16 = arith.constant dense<0.000000e+00> : vector<32x128xf32>
    %24 = tpu.matmul %21, %23, %cst_16 {dimension_numbers = #tpu.dot_dimension_numbers<[1], [0], [0], [1], [0, 0, 1, 1], [], []>} : vector<32x128xbf16>, vector<128x128xbf16>, vector<32x128xf32> -> vector<32x128xf32>
    %c16_17 = arith.constant 16 : index
    %c0_18 = arith.constant 0 : index
    %25 = vector.load %arg9[%c16_17, %c0_18] : memref<64x128xbf16, #tpu.memory_space<vmem>>, vector<32x128xbf16>
    %c1 = arith.constant 1 : index
    %c0_19 = arith.constant 0 : index
    %c0_20 = arith.constant 0 : index
    %26 = vector.load %arg2[%c1, %c0_19, %c0_20] : memref<3x128x128xbf16, #tpu.memory_space<vmem>>, vector<1x128x128xbf16>
    %27 = vector.shape_cast %26 : vector<1x128x128xbf16> to vector<128x128xbf16>
    %cst_21 = arith.constant dense<0.000000e+00> : vector<32x128xf32>
    %28 = tpu.matmul %25, %27, %cst_21 {dimension_numbers = #tpu.dot_dimension_numbers<[1], [0], [0], [1], [0, 0, 1, 1], [], []>} : vector<32x128xbf16>, vector<128x128xbf16>, vector<32x128xf32> -> vector<32x128xf32>
    %c17 = arith.constant 17 : index
    %c0_22 = arith.constant 0 : index
    %29 = vector.load %arg9[%c17, %c0_22] : memref<64x128xbf16, #tpu.memory_space<vmem>>, vector<32x128xbf16>
    %c2 = arith.constant 2 : index
    %c0_23 = arith.constant 0 : index
    %c0_24 = arith.constant 0 : index
    %30 = vector.load %arg2[%c2, %c0_23, %c0_24] : memref<3x128x128xbf16, #tpu.memory_space<vmem>>, vector<1x128x128xbf16>
    %31 = vector.shape_cast %30 : vector<1x128x128xbf16> to vector<128x128xbf16>
    %cst_25 = arith.constant dense<0.000000e+00> : vector<32x128xf32>
    %32 = tpu.matmul %29, %31, %cst_25 {dimension_numbers = #tpu.dot_dimension_numbers<[1], [0], [0], [1], [0, 0, 1, 1], [], []>} : vector<32x128xbf16>, vector<128x128xbf16>, vector<32x128xf32> -> vector<32x128xf32>
    %33 = tpu.iota {dimensions = array<i32: 1>} : vector<2x16x1xi32>
    %34 = vector.shape_cast %33 : vector<2x16x1xi32> to vector<32x1xi32>
    %c0_i32 = arith.constant 0 : i32
    %35 = vector.broadcast %c0_i32 : i32 to vector<32x1xi32>
    %36 = arith.cmpi ne, %34, %35 : vector<32x1xi32>
    %37 = arith.extui %36 : vector<32x1xi1> to vector<32x1xi32>
    %38 = arith.sitofp %37 : vector<32x1xi32> to vector<32x1xf32>
    %c15_i32 = arith.constant 15 : i32
    %39 = vector.broadcast %c15_i32 : i32 to vector<32x1xi32>
    %40 = arith.cmpi ne, %34, %39 : vector<32x1xi32>
    %41 = arith.extui %40 : vector<32x1xi1> to vector<32x1xi32>
    %42 = arith.sitofp %41 : vector<32x1xi32> to vector<32x1xf32>
    %43 = vector.broadcast %38 : vector<32x1xf32> to vector<32x128xf32>
    %44 = arith.mulf %24, %43 : vector<32x128xf32>
    %45 = arith.addf %28, %44 : vector<32x128xf32>
    %46 = vector.broadcast %42 : vector<32x1xf32> to vector<32x128xf32>
    %47 = arith.mulf %32, %46 : vector<32x128xf32>
    %48 = arith.addf %45, %47 : vector<32x128xf32>
    %cst_26 = arith.constant dense<0.000000e+00> : vector<128xf32>
    %49 = vector.multi_reduction <add>, %48, %cst_26 [0] : vector<32x128xf32> to vector<128xf32>
    %50 = vector.shape_cast %49 : vector<128xf32> to vector<1x128xf32>
    %51 = arith.mulf %48, %48 : vector<32x128xf32>
    %cst_27 = arith.constant dense<0.000000e+00> : vector<128xf32>
    %52 = vector.multi_reduction <add>, %51, %cst_27 [0] : vector<32x128xf32> to vector<128xf32>
    %53 = vector.shape_cast %52 : vector<128xf32> to vector<1x128xf32>
    %54 = tpu.concatenate %50, %53 in 0 : vector<1x128xf32>, vector<1x128xf32> -> vector<2x128xf32>
    %c0_28 = arith.constant 0 : index
    %c0_29 = arith.constant 0 : index
    %55 = vector.load %arg6[%c0_28, %c0_29] : memref<128x8xbf16, #tpu.memory_space<vmem>>, vector<128x8xbf16>
    %56 = arith.extf %55 : vector<128x8xbf16> to vector<128x8xf32>
    %cst_30 = arith.constant dense<0.000000e+00> : vector<2x8xf32>
    %57 = tpu.matmul %54, %56, %cst_30 {dimension_numbers = #tpu.dot_dimension_numbers<[1], [0], [0], [1], [0, 0, 1, 1], [], []>} : vector<2x128xf32>, vector<128x8xf32>, vector<2x8xf32> -> vector<2x8xf32>
    %c0_31 = arith.constant 0 : index
    %c0_32 = arith.constant 0 : index
    %c0_33 = arith.constant 0 : index
    %58 = vector.load %arg8[%c0_31, %c0_32, %c0_33] : memref<1x2x8xf32, #tpu.memory_space<vmem>>, vector<1x2x8xf32>
    %59 = vector.shape_cast %58 : vector<1x2x8xf32> to vector<2x8xf32>
    %60 = vector.shape_cast %57 : vector<2x8xf32> to vector<1x2x8xf32>
    tpu.vector_store %arg8[%c0_31, %c0_32, %c0_33], %60 {strides = array<i32>} : memref<1x2x8xf32, #tpu.memory_space<vmem>>, vector<1x2x8xf32>,
    %c0_34 = arith.constant 0 : index
    %c0_35 = arith.constant 0 : index
    %61 = vector.load %arg3[%c0_34, %c0_35] : memref<1x128xf32, #tpu.memory_space<vmem>>, vector<1x128xf32>
    %62 = vector.shape_cast %61 : vector<1x128xf32> to vector<128xf32>
    %63 = vector.shape_cast %62 : vector<128xf32> to vector<1x128xf32>
    %64 = vector.broadcast %63 : vector<1x128xf32> to vector<32x128xf32>
    %65 = arith.addf %48, %64 : vector<32x128xf32>
    %66 = vector.shape_cast %65 : vector<32x128xf32> to vector<2x16x128xf32>
    %67 = arith.truncf %66 : vector<2x16x128xf32> to vector<2x16x128xbf16>
    %c0_36 = arith.constant 0 : index
    %c0_37 = arith.constant 0 : index
    %c0_38 = arith.constant 0 : index
    %68 = vector.load %arg7[%c0_36, %c0_37, %c0_38] : memref<2x16x128xbf16, #tpu.memory_space<vmem>>, vector<2x16x128xbf16>
    tpu.vector_store %arg7[%c0_36, %c0_37, %c0_38], %67 {strides = array<i32>} : memref<2x16x128xbf16, #tpu.memory_space<vmem>>, vector<2x16x128xbf16>,
    return
  }
  func.func @transform_0(%arg0: i32) -> (i32, i32, i32) {
    %c0_i32 = arith.constant 0 : i32
    %c0_i32_0 = arith.constant 0 : i32
    %c0_i32_1 = arith.constant 0 : i32
    return %arg0, %c0_i32, %c0_i32_0 : i32, i32, i32
  }
  func.func @transform_1(%arg0: i32) -> (i32, i32, i32) {
    %c0_i32 = arith.constant 0 : i32
    %c0_i32_0 = arith.constant 0 : i32
    %c0_i32_1 = arith.constant 0 : i32
    %c0_i32_2 = arith.constant 0 : i32
    return %c0_i32, %c0_i32_0, %c0_i32_1 : i32, i32, i32
  }
  func.func @transform_2(%arg0: i32) -> (i32, i32) {
    %c0_i32 = arith.constant 0 : i32
    %c0_i32_0 = arith.constant 0 : i32
    %c0_i32_1 = arith.constant 0 : i32
    return %c0_i32, %c0_i32_0 : i32, i32
  }
  func.func @transform_3(%arg0: i32) -> (i32, i32) {
    %c0_i32 = arith.constant 0 : i32
    %c0_i32_0 = arith.constant 0 : i32
    %c0_i32_1 = arith.constant 0 : i32
    return %c0_i32, %c0_i32_0 : i32, i32
  }
  func.func @transform_4(%arg0: i32) -> (i32, i32) {
    %c0_i32 = arith.constant 0 : i32
    %c0_i32_0 = arith.constant 0 : i32
    %c0_i32_1 = arith.constant 0 : i32
    return %c0_i32, %c0_i32_0 : i32, i32
  }
  func.func @transform_5(%arg0: i32) -> (i32, i32) {
    %c0_i32 = arith.constant 0 : i32
    %c0_i32_0 = arith.constant 0 : i32
    %c0_i32_1 = arith.constant 0 : i32
    return %c0_i32, %c0_i32_0 : i32, i32
  }
  func.func @transform_6(%arg0: i32) -> (i32, i32, i32) {
    %c0_i32 = arith.constant 0 : i32
    %c0_i32_0 = arith.constant 0 : i32
    %c0_i32_1 = arith.constant 0 : i32
    return %arg0, %c0_i32, %c0_i32_0 : i32, i32, i32
  }
  func.func @transform_7(%arg0: i32) -> (i32, i32, i32) {
    %c0_i32 = arith.constant 0 : i32
    %c0_i32_0 = arith.constant 0 : i32
    %c0_i32_1 = arith.constant 0 : i32
    return %arg0, %c0_i32, %c0_i32_0 : i32, i32, i32
  }
}

</mosaic_0001>

<bundles_post_ra>
// kernel: tile.27
= control target key start
LH: loop header
LB: loop body
LE: loop exit
PB: predicated region body
PF: predicated region fallthrough
CT: control target
= control target key end

     0   :  { %s28_s0 = inlined_call_operand.vmem [shape: f32[8], index: 0, kind: input, shape index: {}]   ;;  %s29_s1 = inlined_call_operand.vmem [shape: f32[16,8], index: 1, kind: output, shape index: {}]  }
   0x1   :  { %v4_v0 = vld [vmem:[%s28_s0] ss:$0 sm:$0xff] }
   0x2   :  { %5 = vst [vmem:[%s29_s1] sm:$0xff] %v4_v0  ;;  %8 = vst [vmem:[%s29_s1 + $0x8] sm:$0xff] %v4_v0 }

// kernel: tile.28
= control target key start
LH: loop header
LB: loop body
LE: loop exit
PB: predicated region body
PF: predicated region fallthrough
CT: control target
= control target key end

     0   :  { %s131_s10 = smov 120   ;;  %s132_s11 = smov 104   ;;  %vm3_vm0 = vcmask 64512   ;;  %vm9_vm1 = vcmask 1048512   ;;  %vm15_vm2 = vcmask 982912   ;;  %vm21_vm3 = vcmask 917312   ;;  %s207_s0 = inlined_call_operand.vmem [shape: f32[16,8], index: 0, kind: input, shape index: {}]   ;;  %s208_s1 = inlined_call_operand.vmem [shape: f32[1,128], index: 1, kind: output, shape index: {}]  }
   0x1   :  { %v101_v0 = vld [vmem:[%s207_s0 + $0xf] sm:$0x1]   ;;  %v103_v1 = vld [vmem:[%s207_s0 + $0xd] sm:$0x1]   ;;  %v102_v2 = vld [vmem:[%s207_s0 + $0xe] sm:$0x1]  }
   0x2   :  { %7 = vrot.lane.b32.xlu0 %v101_v0, %s131_s10  ;;  %19 = vrot.lane.b32.xlu1 %v103_v1, %s132_s11  ;;  %v104_v3 = vld [vmem:[%s207_s0 + $0xc] sm:$0x1]   ;;  %s133_s16 = smov 112   ;;  %s134_s17 = smov 96   ;;  %v105_v4 = vld [vmem:[%s207_s0 + $0xb] sm:$0x1]  }
   0x3   :  { %v106_v5 = vld [vmem:[%s207_s0 + $0xa] sm:$0x1]   ;;  %v2_v6 = vld [vmem:[%s207_s0] sm:$0x1]   ;;  %s135_s24 = smov 88   ;;  %s136_s25 = smov 80  }
   0x4   :  { %4 = vst.msk [vmem:[#allocation0] sm:$0x1] %vm3_vm0, %v2_v6   ;;  %v107_v7 = vld [vmem:[%s207_s0 + $0x9] sm:$0x1]   ;;  %v108_v8 = vld [vmem:[%s207_s0 + $0x8] sm:$0x1]  }
   0x5   :  { %s137_s30 = smov 72   ;;  %s138_s2 = smov 64   ;;  %v109_v9 = vld [vmem:[%s207_s0 + $0x7] sm:$0x1]   ;;  %v110_v10 = vld [vmem:[%s207_s0 + $0x6] sm:$0x1]  }
   0x6   :  { %13 = vrot.lane.b32.xlu0 %v102_v2, %s133_s16  ;;  %25 = vrot.lane.b32.xlu1 %v104_v3, %s134_s17  ;;  %s139_s7 = smov 56   ;;  %s140_s8 = smov 48   ;;  %v111_v11 = vld [vmem:[%s207_s0 + $0x5] sm:$0x1]   ;;  %v112_v12 = vld [vmem:[%s207_s0 + $0x4] sm:$0x1]  }
   0x7   :  { %s141_s13 = smov 40   ;;  %s142_s14 = smov 32   ;;  %v113_v13 = vld [vmem:[%s207_s0 + $0x3] sm:$0x1]   ;;  %v114_v14 = vld [vmem:[%s207_s0 + $0x2] sm:$0x1]  }
   0x8   :  { %s143_s19 = smov 24   ;;  %s144_s20 = smov 16   ;;  %v115_v15 = vld [vmem:[%s207_s0 + $0x1] sm:$0x1]   ;;  %vm27_vm4 = vcmask 851712   ;;  %vm33_vm5 = vcmask 786112  }
   0x9   :  { %s145_s0 = smov 8   ;;  %vm39_vm6 = vcmask 720512   ;;  %vm45_vm7 = vcmask 654912   ;;  %vm51_vm8 = vcmask 589312   ;;  %vm57_vm9 = vcmask 523712  }
   0xa   :  { %31 = vrot.lane.b32.xlu0 %v105_v4, %s135_s24  ;;  %37 = vrot.lane.b32.xlu1 %v106_v5, %s136_s25  ;;  %vm63_vm10 = vcmask 458112   ;;  %vm69_vm11 = vcmask 392512   ;;  %vm75_vm12 = vcmask 326912   ;;  %vm81_vm13 = vcmask 261312  }
   0xb   :  { %vm87_vm14 = vcmask 195712   ;;  %vm93_vm15 = vcmask 130112  }
   0xe   :  { %43 = vrot.lane.b32.xlu0 %v107_v7, %s137_s30  ;;  %49 = vrot.lane.b32.xlu1 %v108_v8, %s138_s2 }
  0x12   :  { %55 = vrot.lane.b32.xlu0 %v109_v9, %s139_s7  ;;  %61 = vrot.lane.b32.xlu1 %v110_v10, %s140_s8 }
  0x16   :  { %67 = vrot.lane.b32.xlu0 %v111_v11, %s141_s13  ;;  %73 = vrot.lane.b32.xlu1 %v112_v12, %s142_s14 }
  0x1a   :  { %79 = vrot.lane.b32.xlu0 %v113_v13, %s143_s19  ;;  %85 = vrot.lane.b32.xlu1 %v114_v14, %s144_s20 }
  0x1e   :  { %91 = vrot.lane.b32.xlu0 %v115_v15, %s145_s0 }
  0x74   :  { %v8_v16 = vpop.permute.xlu0 %7   ;;  %v20_v17 = vpop.permute.xlu1 %19  }
  0x75   :  { %10 = vst.msk [vmem:[#allocation0] sm:$0x1] %vm9_vm1, %v8_v16  }
  0x78   :  { %v14_v18 = vpop.permute.xlu0 %13   ;;  %v26_v19 = vpop.permute.xlu1 %25  }
  0x79   :  { %16 = vst.msk [vmem:[#allocation0] sm:$0x1] %vm15_vm2, %v14_v18  }
  0x7a   :  { %22 = vst.msk [vmem:[#allocation0] sm:$0x1] %vm21_vm3, %v20_v17  }
  0x7b   :  { %28 = vst.msk [vmem:[#allocation0] sm:$0x1] %vm27_vm4, %v26_v19  }
  0x7c   :  { %v32_v20 = vpop.permute.xlu0 %31   ;;  %v38_v21 = vpop.permute.xlu1 %37  }
  0x7d   :  { %34 = vst.msk [vmem:[#allocation0] sm:$0x1] %vm33_vm5, %v32_v20  }
  0x7e   :  { %40 = vst.msk [vmem:[#allocation0] sm:$0x1] %vm39_vm6, %v38_v21  }
  0x80   :  { %v44_v22 = vpop.permute.xlu0 %43   ;;  %v50_v23 = vpop.permute.xlu1 %49  }
  0x81   :  { %46 = vst.msk [vmem:[#allocation0] sm:$0x1] %vm45_vm7, %v44_v22  }
  0x82   :  { %52 = vst.msk [vmem:[#allocation0] sm:$0x1] %vm51_vm8, %v50_v23  }
  0x84   :  { %v56_v24 = vpop.permute.xlu0 %55   ;;  %v62_v25 = vpop.permute.xlu1 %61  }
  0x85   :  { %58 = vst.msk [vmem:[#allocation0] sm:$0x1] %vm57_vm9, %v56_v24  }
  0x86   :  { %64 = vst.msk [vmem:[#allocation0] sm:$0x1] %vm63_vm10, %v62_v25  }
  0x88   :  { %v68_v26 = vpop.permute.xlu0 %67   ;;  %v74_v27 = vpop.permute.xlu1 %73  }
  0x89   :  { %70 = vst.msk [vmem:[#allocation0] sm:$0x1] %vm69_vm11, %v68_v26  }
  0x8a   :  { %76 = vst.msk [vmem:[#allocation0] sm:$0x1] %vm75_vm12, %v74_v27  }
  0x8c   :  { %v80_v28 = vpop.permute.xlu0 %79   ;;  %v86_v29 = vpop.permute.xlu1 %85  }
  0x8d   :  { %82 = vst.msk [vmem:[#allocation0] sm:$0x1] %vm81_vm13, %v80_v28  }
  0x8e   :  { %88 = vst.msk [vmem:[#allocation0] sm:$0x1] %vm87_vm14, %v86_v29  }
  0x90   :  { %v92_v30 = vpop.permute.xlu0 %91  }
  0x91   :  { %94 = vst.msk [vmem:[#allocation0] sm:$0x1] %vm93_vm15, %v92_v30  }
  0x98   :  { %v98_v31 = vld [vmem:[#allocation0] sm:$0x1] }
  0x99   :  { %100 = vst [vmem:[%s208_s1] sm:$0x1] %v98_v31 }

// kernel: tile.22
= control target key start
LH: loop header
LB: loop body
LE: loop exit
PB: predicated region body
PF: predicated region fallthrough
CT: control target
= control target key end

     0   :  { %s20_s0 = inlined_call_operand.<no memory space> [shape: f32[], index: 0, kind: input, shape index: {}]   ;;  %s21_s1 = inlined_call_operand.vmem [shape: f32[1,64], index: 1, kind: output, shape index: {}]  }
   0x1   :  { %v2_v0 = vstv %s20_s0 }
   0x2   :  { %3 = vst [vmem:[%s21_s1] sm:$0x1] %v2_v0 }

// kernel: unet_conv2_forward.2
= control target key start
LH: loop header
LB: loop body
LE: loop exit
PB: predicated region body
PF: predicated region fallthrough
CT: control target
= control target key end

     0   :  { %vm56_vm0 = vcmask 523264   ;;  %v818_v1 = vmov 0   ;;  %vm74_vm1 = vsmask.f32 256  ;;  %vm195_vm2 = vsmask.f32 7424  ;;  %s958_s1 = inlined_call_operand.vmem [shape: bf16[3,64,128], index: 1, kind: input, shape index: {}]   ;;  %s959_s0 = inlined_call_operand.vmem [shape: bf16[2,16,64], index: 0, kind: input, shape index: {}]   ;;  %s960_s3 = inlined_call_operand.vmem [shape: f32[1,64], index: 3, kind: input, shape index: {}]   ;;  %s961_s4 = inlined_call_operand.vmem [shape: f32[1,64], index: 4, kind: input, shape index: {}]   ;;  %s962_s5 = inlined_call_operand.vmem [shape: bf16[128,8], index: 5, kind: input, shape index: {}]   ;;  %s963_s2 = inlined_call_operand.vmem [shape: f32[1,128], index: 2, kind: input, shape index: {}]   ;;  %s964_s6 = inlined_call_operand.vmem [shape: bf16[2,16,128], index: 6, kind: output, shape index: {0}]   ;;  %s965_s7 = inlined_call_operand.vmem [shape: f32[1,2,8], index: 7, kind: output, shape index: {1}]  }
   0x1   :  { %v806_v0 = vld [vmem:[%s958_s1] sm:$0xff]   ;;  %57 = vst.msk [vmem:[#allocation2] sm:$0xff] %vm56_vm0, %v818_v1  ;;  %58 = vst.msk [vmem:[#allocation2 + $0x18] sm:$0xff] %vm56_vm0, %v818_v1  ;;  %v807_v2 = vld [vmem:[%s958_s1 + $0x8] sm:$0xff]   ;;  %v819_v55 = vmov 0.0|0.0   ;;  %vm820_vm3 = vmmov 0   ;;  %v295_v1 = vlaneseq }
   0x2   :  { %707 = vmatprep.subr.bf16.mxu0 %v806_v0  ;;  %v808_v3 = vld [vmem:[%s958_s1 + $0x10] sm:$0xff]   ;;  %v810_v4 = vld [vmem:[%s958_s1 + $0x40] sm:$0xff]   ;;  %v663_v6 = vld [vmem:[%s959_s0 + $0x8] sm:$0xff]   ;;  %v821_v62 = vmov 0.0   ;;  %vm421_vm6 = vcmask 1040384   ;;  %vm525_vm7 = vcmask 58368  }
   0x3   :  { %708 = vmatpush3.bf16.msra.mxu0 %v806_v0  ;;  %v614_v5 = vld [vmem:[%s959_s0] sm:$0xff]   ;;  %719 = vmatprep.subr.bf16.mxu1 %v810_v4  ;;  %v619_v10 = vunpack.c.l.bf16 %v663_v6  ;;  %v620_v11 = vunpack.c.h.bf16 %v663_v6  ;;  %v809_v12 = vld [vmem:[%s958_s1 + $0x18] sm:$0xff]   ;;  %v812_v17 = vld [vmem:[%s958_s1 + $0x48] sm:$0xff]  }
   0x4   :  { %709 = vmatprep.subr.bf16.mxu0 %v807_v2  ;;  %v566_v7 = vld [vmem:[%s960_s3] ss:$0 sm:$0xff]  ;;  %v615_v8 = vunpack.c.l.bf16 %v614_v5  ;;  %v616_v9 = vunpack.c.h.bf16 %v614_v5  ;;  %720 = vmatpush3.bf16.msra.mxu1 %v810_v4  ;;  %v814_v22 = vld [vmem:[%s958_s1 + $0x50] sm:$0xff]   ;;  %v816_v26 = vld [vmem:[%s958_s1 + $0x58] sm:$0xff]  }
   0x5   :  { %v567_v13 = vld [vmem:[%s961_s4] ss:$0 sm:$0xff]  ;;  %v43_v16 = vmul.f32 %v619_v10, %v566_v7  ;;  %v44_v18 = vmul.f32 %v620_v11, %v566_v7  ;;  %721 = vmatprep.subr.bf16.mxu1 %v812_v17  ;;  %v813_v49 = vld [vmem:[%s958_s1 + $0x28] sm:$0xff]   ;;  %v815_v53 = vld [vmem:[%s958_s1 + $0x30] sm:$0xff]  }
   0x6   :  { %v41_v14 = vmul.f32 %v615_v8, %v566_v7  ;;  %v42_v15 = vmul.f32 %v616_v9, %v566_v7  ;;  %v811_v23 = vld [vmem:[%s958_s1 + $0x20] sm:$0xff]   ;;  %v817_v54 = vld [vmem:[%s958_s1 + $0x38] sm:$0xff]   ;;  %v664_v57 = vld [vmem:[%s962_s5 + $0x8] sm:$0xff]  }
   0x7   :  { %710 = vmatpush3.bf16.msra.mxu0 %v807_v2  ;;  %v54_v21 = vadd.f32 %v567_v13, %v43_v16  ;;  %v55_v24 = vadd.f32 %v567_v13, %v44_v18  ;;  %v622_v56 = vld [vmem:[%s962_s5] sm:$0xff]   ;;  %v665_v58 = vld [vmem:[%s962_s5 + $0x10] sm:$0xff]   ;;  %v666_v59 = vld [vmem:[%s962_s5 + $0x18] sm:$0xff]   ;;  %v296_v2 = vshrl.u32 %v295_v1, 7 }
   0x8   :  { %711 = vmatprep.subr.bf16.mxu0 %v808_v3  ;;  %v52_v19 = vadd.f32 %v567_v13, %v41_v14  ;;  %v53_v20 = vadd.f32 %v567_v13, %v42_v15  ;;  %722 = vmatpush3.bf16.msra.mxu1 %v812_v17  ;;  %v63_v28 = vld [vmem:[#allocation2] sm:$0x80]  ;;  %v185_v29 = vld [vmem:[#allocation2 + $0x18] sm:$0x1]  ;;  %v668_v61 = vld [vmem:[%s962_s5 + $0x28] sm:$0xff]  }
   0x9   :  { %723 = vmatprep.subr.bf16.mxu1 %v814_v22  ;;  %v60_v27 = vpack.c.bf16 %v55_v24, %v54_v21  ;;  %v76_v30 = vshrl.u32 %v63_v28, 16  ;;  %v212_v32 = vshll.u32 %v185_v29, 16  ;;  %v667_v60 = vld [vmem:[%s962_s5 + $0x20] sm:$0xff]   ;;  %v669_v63 = vld [vmem:[%s962_s5 + $0x30] sm:$0xff]   ;;  %v670_v0 = vld [vmem:[%s962_s5 + $0x38] sm:$0xff]   ;;  %vm298_vm4 = vcmp.ne.s32.totalorder %v296_v2, 0 }
   0xa   :  { %v59_v25 = vpack.c.bf16 %v53_v20, %v52_v19  ;;  %v596_v4 = vsel %vm298_vm4, 1.0, %v821_v62 }
   0xb   :  { %712 = vmatpush3.bf16.msra.mxu0 %v808_v3  ;;  %62 = vst.msk [vmem:[#allocation2 + $0x10] sm:$0xff] %vm56_vm0, %v60_v27  ;;  %v78_v38 = vrot.slane %v76_v30, 7  ;;  %v214_v43 = vrot.slane %v212_v32, 1  ;;  %v297_v3 = vadd.s32 8, %v296_v2 }
   0xc   :  { %713 = vmatprep.subr.bf16.mxu0 %v809_v12  ;;  %61 = vst.msk [vmem:[#allocation2 + $0x8] sm:$0xff] %vm56_vm0, %v59_v25  ;;  %724 = vmatpush3.bf16.msra.mxu1 %v814_v22 }
   0xd   :  { %725 = vmatprep.subr.bf16.mxu1 %v816_v26  ;;  %vm305_vm5 = vcmp.ne.s32.totalorder %v297_v3, 15 }
   0xe   :  { %v597_v7 = vsel %vm305_vm5, 1.0, %v821_v62 }
   0xf   :  { %714 = vmatpush3.bf16.msra.mxu0 %v809_v12 }
  0x10   :  { %731 = vmatprep.subr.bf16.mxu0 %v811_v23  ;;  %726 = vmatpush3.bf16.msra.mxu1 %v816_v26  ;;  %v604_v26 = vld [vmem:[%s963_s2] ss:$0 sm:$0xff] }
  0x11   :  { %778 = vmatprep.subr.bf16.mxu1 %v819_v55 }
  0x12   :  { %v65_v35 = vld [vmem:[#allocation2 + $0x10] sm:$0xff] }
  0x13   :  { %v64_v31 = vld [vmem:[#allocation2 + $0x8] sm:$0xff]  ;;  %v88_v36 = vshrl.u32 %v65_v35, 16  ;;  %v91_v37 = vshll.u32 %v65_v35, 16 }
  0x14   :  { %v80_v33 = vshrl.u32 %v64_v31, 16  ;;  %v83_v34 = vshll.u32 %v64_v31, 16 }
  0x15   :  { %v90_v41 = vrot.slane %v88_v36, 7  ;;  %v206_v42 = vrot.slane %v91_v37, 1 }
  0x16   :  { %v82_v39 = vrot.slane %v80_v33, 7  ;;  %v201_v40 = vrot.slane %v83_v34, 1 }
  0x17   :  { %v93_v46 = vor.u32 %v91_v37, %v90_v41  ;;  %v210_v47 = vor.u32 %v206_v42, %v88_v36 }
  0x18   :  { %v85_v44 = vor.u32 %v83_v34, %v82_v39  ;;  %v202_v45 = vor.u32 %v201_v40, %v80_v33 }
  0x19   :  { %v94_v51 = vsel %vm74_vm1, %v82_v39, %v93_v46  ;;  %v215_v52 = vsel %vm195_vm2, %v210_v47, %v214_v43 }
  0x1a   :  { %v86_v48 = vsel %vm74_vm1, %v78_v38, %v85_v44  ;;  %v207_v50 = vsel %vm195_vm2, %v202_v45, %v206_v42 }
  0x1b   :  { %715 = vmatprep.mubr.msk.bf16.mxu0 %vm56_vm0, %v86_v48  ;;  %727 = vmatprep.mubr.msk.bf16.mxu1 %vm56_vm0, %v207_v50 }
  0x1c   :  { %716 = vmatmul.mubr.msk.bf16.vlgmr.msra.gmra.mrb[0].mxu0 %vm56_vm0, %v94_v51  ;;  %728 = vmatmul.mubr.msk.bf16.vlgmr.msra.gmra.mrb[0].mxu1 %vm56_vm0, %v215_v52 }
  0x1d   :  { %732 = vmatpush3.bf16.msra.mxu0 %v811_v23  ;;  %739 = vmatprep.mubr.msk.bf16.mxu0 %vm56_vm0, %v64_v31 }
  0x1e   :  { %733 = vmatprep.subr.bf16.mxu0 %v813_v49  ;;  %780 = vmatpush3.bf16.msra.mxu1 %v622_v56 }
  0x1f   :  { %781 = vmatprep.subr.bf16.mxu1 %v819_v55  ;;  %775 = vmatprep.mubr.msk.f32.mxu1 %vm820_vm3, %v821_v62 }
  0x21   :  { %734 = vmatpush3.bf16.msra.mxu0 %v813_v49 }
  0x22   :  { %735 = vmatprep.subr.bf16.mxu0 %v815_v53  ;;  %783 = vmatpush3.bf16.msra.mxu1 %v664_v57 }
  0x23   :  { %784 = vmatprep.subr.bf16.mxu1 %v819_v55 }
  0x25   :  { %736 = vmatpush3.bf16.msra.mxu0 %v815_v53 }
  0x26   :  { %737 = vmatprep.subr.bf16.mxu0 %v817_v54  ;;  %786 = vmatpush3.bf16.msra.mxu1 %v665_v58 }
  0x27   :  { %787 = vmatprep.subr.bf16.mxu1 %v819_v55 }
  0x29   :  { %738 = vmatpush3.bf16.msra.mxu0 %v817_v54 }
  0x2a   :  { %789 = vmatpush3.bf16.msra.mxu1 %v666_v59 }
  0x2b   :  { %790 = vmatprep.subr.bf16.mxu1 %v819_v55 }
  0x2c   :  { %740 = vmatmul.mubr.msk.bf16.vlgmr.msra.gmra.mrb[4].mxu0 %vm56_vm0, %v65_v35 }
  0x2e   :  { %792 = vmatpush3.bf16.msra.mxu1 %v667_v60 }
  0x2f   :  { %793 = vmatprep.subr.bf16.mxu1 %v819_v55 }
  0x32   :  { %795 = vmatpush3.bf16.msra.mxu1 %v668_v61 }
  0x33   :  { %796 = vmatprep.subr.bf16.mxu1 %v819_v55 }
  0x36   :  { %798 = vmatpush3.bf16.msra.mxu1 %v669_v63 }
  0x37   :  { %799 = vmatprep.subr.bf16.mxu1 %v819_v55 }
  0x3a   :  { %801 = vmatpush3.bf16.msra.mxu1 %v670_v0 }
  0xef   :  { %v717_v5 = vpop.f32.mrb[0].mxu0  ;;  %v729_v6 = vpop.f32.mrb[0].mxu1 }
  0xf0   :  { %v312_v8 = vmul.f32 %v717_v5, %v596_v4  ;;  %v159_v9 = vpop.f32.mrb[1].mxu0  ;;  %v280_v10 = vpop.f32.mrb[1].mxu1 }
  0xf1   :  { %v310_v11 = vmul.f32 %v596_v4, %v159_v9  ;;  %v718_v12 = vpop.f32.mrb[2].mxu0  ;;  %v730_v13 = vpop.f32.mrb[2].mxu1 }
  0xf2   :  { %v162_v14 = vpop.f32.mrb[3].mxu0  ;;  %v394_v15 = vmul.f32 %v730_v13, %v597_v7  ;;  %v283_v16 = vpop.f32.mrb[3].mxu1 }
  0xf3   :  { %v392_v17 = vmul.f32 %v597_v7, %v283_v16 }
  0xff   :  { %v741_v18 = vpop.f32.mrb[4].mxu0 }
 0x100   :  { %v385_v19 = vadd.f32 %v741_v18, %v312_v8  ;;  %v376_v20 = vpop.f32.mrb[5].mxu0 }
 0x101   :  { %v377_v21 = vadd.f32 %v376_v20, %v310_v11  ;;  %v742_v22 = vpop.f32.mrb[6].mxu0 }
 0x102   :  { %v397_v23 = vadd.f32 %v729_v6, %v385_v19  ;;  %v388_v24 = vadd.f32 %v742_v22, %v718_v12  ;;  %v379_v25 = vpop.f32.mrb[7].mxu0 }
 0x103   :  { %v395_v27 = vadd.f32 %v377_v21, %v280_v10  ;;  %v380_v28 = vadd.f32 %v379_v25, %v162_v14 }
 0x104   :  { %v398_v29 = vadd.f32 %v394_v15, %v388_v24  ;;  %v536_v31 = vadd.f32 %v604_v26, %v397_v23  ;;  %v410_v39 = vmul.f32 %v397_v23, %v397_v23 }
 0x105   :  { %v396_v30 = vadd.f32 %v392_v17, %v380_v28  ;;  %v408_v32 = vmul.f32 %v395_v27, %v395_v27  ;;  %v534_v34 = vadd.f32 %v604_v26, %v395_v27 }
 0x106   :  { %v537_v33 = vadd.f32 %v604_v26, %v398_v29  ;;  %v411_v43 = vmul.f32 %v398_v29, %v398_v29 }
 0x107   :  { %v399_v35 = vadd.f32 %v396_v30, %v395_v27  ;;  %v409_v36 = vmul.f32 %v396_v30, %v396_v30  ;;  %v535_v37 = vadd.f32 %v604_v26, %v396_v30 }
 0x108   :  { %v661_v38 = vpack.c.bf16 %v537_v33, %v536_v31 }
 0x109   :  { %v400_v40 = vadd.f32 %v399_v35, %v397_v23  ;;  %v412_v41 = vadd.f32 %v409_v36, %v408_v32  ;;  %v656_v42 = vpack.c.bf16 %v535_v37, %v534_v34 }
 0x10a   :  { %671 = vst [vmem:[%s964_s6 + $0x8] sm:$0xff] %v661_v38  }
 0x10b   :  { %v401_v44 = vadd.f32 %v400_v40, %v398_v29  ;;  %v413_v45 = vadd.f32 %v412_v41, %v410_v39  ;;  %657 = vst [vmem:[%s964_s6] sm:$0xff] %v656_v42  }
 0x10d   :  { %v402_v46 = vrot.slane %v401_v44, 4  ;;  %v414_v47 = vadd.f32 %v413_v45, %v411_v43 }
 0x10f   :  { %v403_v48 = vadd.f32 %v402_v46, %v401_v44  ;;  %v415_v49 = vrot.slane %v414_v47, 4 }
 0x111   :  { %v404_v50 = vrot.slane %v403_v48, 2  ;;  %v416_v51 = vadd.f32 %v415_v49, %v414_v47 }
 0x113   :  { %v405_v52 = vadd.f32 %v404_v50, %v403_v48  ;;  %v417_v53 = vrot.slane %v416_v51, 2 }
 0x115   :  { %v406_v54 = vrot.slane %v405_v52, 1  ;;  %v418_v55 = vadd.f32 %v417_v53, %v416_v51 }
 0x117   :  { %v419_v56 = vrot.slane %v418_v55, 1  ;;  %v407_v57 = vadd.f32 %v406_v54, %v405_v52 }
 0x119   :  { %v420_v58 = vadd.f32 %v419_v56, %v418_v55 }
 0x11b   :  { %v422_v59 = vsel %vm421_vm6, %v407_v57, %v420_v58 }
 0x11c   :  { %776 = vmatmul.mubr.f32.vlgmr.msra.gmra.mrb[4].mxu1 %v422_v59 }
 0x1ef   :  { %v521_v60 = vpop.f32.mrb[4].mxu1 }
 0x1f0   :  { %526 = vst.msk [vmem:[%s965_s7] sm:$0x3] %vm525_vm7, %v521_v60  ;;  %v777_v61 = vpop.f32.mrb[5].mxu1 }

// kernel: unet_conv2_forward.3
= control target key start
LH: loop header
LB: loop body
LE: loop exit
PB: predicated region body
PF: predicated region fallthrough
CT: control target
= control target key end

     0   :  { %v975_v1 = vmov 0   ;;  %vm85_vm0 = vsmask.f32 256  ;;  %vm242_vm1 = vsmask.f32 7424  ;;  %vm977_vm2 = vmmov 0   ;;  %s1148_s1 = inlined_call_operand.vmem [shape: bf16[3,128,128], index: 1, kind: input, shape index: {}]   ;;  %s1149_s0 = inlined_call_operand.vmem [shape: bf16[2,16,128], index: 0, kind: input, shape index: {}]   ;;  %s1150_s3 = inlined_call_operand.vmem [shape: f32[1,128], index: 3, kind: input, shape index: {}]   ;;  %s1151_s4 = inlined_call_operand.vmem [shape: f32[1,128], index: 4, kind: input, shape index: {}]   ;;  %s1152_s5 = inlined_call_operand.vmem [shape: bf16[128,8], index: 5, kind: input, shape index: {}]   ;;  %s1153_s2 = inlined_call_operand.vmem [shape: f32[1,128], index: 2, kind: input, shape index: {}]   ;;  %s1154_s6 = inlined_call_operand.vmem [shape: bf16[2,16,128], index: 6, kind: output, shape index: {0}]   ;;  %s1155_s7 = inlined_call_operand.vmem [shape: f32[1,2,8], index: 7, kind: output, shape index: {1}]  }
   0x1   :  { %v951_v0 = vld [vmem:[%s1148_s1] sm:$0xff]   ;;  %60 = vst [vmem:[#allocation2] sm:$0xff] %v975_v1  ;;  %61 = vst [vmem:[#allocation2 + $0x18] sm:$0xff] %v975_v1  ;;  %v952_v2 = vld [vmem:[%s1148_s1 + $0x8] sm:$0xff]   ;;  %vm508_vm5 = vcmask 1040384   ;;  %vm612_vm6 = vcmask 58368  }
   0x2   :  { %828 = vmatprep.subr.bf16.mxu0 %v951_v0  ;;  %v953_v3 = vld [vmem:[%s1148_s1 + $0x10] sm:$0xff]   ;;  %v954_v4 = vld [vmem:[%s1148_s1 + $0x18] sm:$0xff]   ;;  %v959_v5 = vld [vmem:[%s1148_s1 + $0x80] sm:$0xff]  }
   0x3   :  { %829 = vmatpush3.bf16.msra.mxu0 %v951_v0  ;;  %v723_v6 = vld [vmem:[%s1149_s0] sm:$0xff]   ;;  %848 = vmatprep.subr.bf16.mxu1 %v959_v5  ;;  %v772_v11 = vld [vmem:[%s1149_s0 + $0x8] sm:$0xff]   ;;  %v963_v22 = vld [vmem:[%s1148_s1 + $0x90] sm:$0xff]  }
   0x4   :  { %830 = vmatprep.subr.bf16.mxu0 %v952_v2  ;;  %v653_v7 = vld [vmem:[%s1150_s3] ss:$0 sm:$0xff]  ;;  %v724_v9 = vunpack.c.l.bf16 %v723_v6  ;;  %v725_v10 = vunpack.c.h.bf16 %v723_v6  ;;  %849 = vmatpush3.bf16.msra.mxu1 %v959_v5  ;;  %v728_v13 = vunpack.c.l.bf16 %v772_v11  ;;  %v729_v14 = vunpack.c.h.bf16 %v772_v11  ;;  %v961_v17 = vld [vmem:[%s1148_s1 + $0x88] sm:$0xff]   ;;  %v965_v29 = vld [vmem:[%s1148_s1 + $0x98] sm:$0xff]  }
   0x5   :  { %v955_v8 = vld [vmem:[%s1148_s1 + $0x20] sm:$0xff]   ;;  %850 = vmatprep.subr.bf16.mxu1 %v961_v17  ;;  %v956_v26 = vld [vmem:[%s1148_s1 + $0x28] sm:$0xff]   ;;  %v957_v32 = vld [vmem:[%s1148_s1 + $0x30] sm:$0xff]   ;;  %v976_v5 = vmov 0.0|0.0  }
   0x6   :  { %v654_v12 = vld [vmem:[%s1151_s4] ss:$0 sm:$0xff]  ;;  %v41_v15 = vmul.f32 %v724_v9, %v653_v7  ;;  %v42_v16 = vmul.f32 %v725_v10, %v653_v7  ;;  %v43_v18 = vmul.f32 %v728_v13, %v653_v7  ;;  %v44_v19 = vmul.f32 %v729_v14, %v653_v7  ;;  %v958_v40 = vld [vmem:[%s1148_s1 + $0x38] sm:$0xff]   ;;  %v969_v46 = vld [vmem:[%s1148_s1 + $0xa8] sm:$0xff]  }
   0x7   :  { %831 = vmatpush3.bf16.msra.mxu0 %v952_v2  ;;  %v967_v36 = vld [vmem:[%s1148_s1 + $0xa0] sm:$0xff]   ;;  %v971_v53 = vld [vmem:[%s1148_s1 + $0xb0] sm:$0xff]   ;;  %v962_v57 = vld [vmem:[%s1148_s1 + $0x48] sm:$0xff]  }
   0x8   :  { %832 = vmatprep.subr.bf16.mxu0 %v953_v3  ;;  %v52_v20 = vadd.f32 %v654_v12, %v41_v15  ;;  %v53_v21 = vadd.f32 %v654_v12, %v42_v16  ;;  %v66_v23 = vld [vmem:[#allocation2] sm:$0x80]  ;;  %v54_v24 = vadd.f32 %v654_v12, %v43_v18  ;;  %v55_v25 = vadd.f32 %v654_v12, %v44_v19  ;;  %v224_v55 = vld [vmem:[#allocation2 + $0x18] sm:$0x1]  ;;  %v964_v60 = vld [vmem:[%s1148_s1 + $0x50] sm:$0xff]  }
   0x9   :  { %851 = vmatpush3.bf16.msra.mxu1 %v961_v17  ;;  %v87_v34 = vshrl.u32 %v66_v23, 16  ;;  %v960_v52 = vld [vmem:[%s1148_s1 + $0x40] sm:$0xff]   ;;  %v259_v58 = vshll.u32 %v224_v55, 16  ;;  %v973_v59 = vld [vmem:[%s1148_s1 + $0xb8] sm:$0xff]   ;;  %v970_v2 = vld [vmem:[%s1148_s1 + $0x68] sm:$0xff]   ;;  %v978_v12 = vmov 0.0   ;;  %v362_v15 = vlaneseq }
   0xa   :  { %v56_v27 = vmax.f32 %v52_v20, 0.0  ;;  %v57_v28 = vmax.f32 %v53_v21, 0.0  ;;  %852 = vmatprep.subr.bf16.mxu1 %v963_v22  ;;  %v58_v30 = vmax.f32 %v54_v24, 0.0  ;;  %v59_v31 = vmax.f32 %v55_v25, 0.0  ;;  %v966_v63 = vld [vmem:[%s1148_s1 + $0x58] sm:$0xff]   ;;  %v968_v1 = vld [vmem:[%s1148_s1 + $0x60] sm:$0xff]  }
   0xb   :  { %833 = vmatpush3.bf16.msra.mxu0 %v953_v3  ;;  %v89_v41 = vrot.slane %v87_v34, 7  ;;  %v261_v62 = vrot.slane %v259_v58, 1  ;;  %v972_v3 = vld [vmem:[%s1148_s1 + $0x70] sm:$0xff]   ;;  %v731_v6 = vld [vmem:[%s1152_s5] sm:$0xff]   ;;  %v773_v7 = vld [vmem:[%s1152_s5 + $0x8] sm:$0xff]   ;;  %v363_v16 = vshrl.u32 %v362_v15, 7 }
   0xc   :  { %834 = vmatprep.subr.bf16.mxu0 %v954_v4  ;;  %v62_v33 = vpack.c.bf16 %v57_v28, %v56_v27  ;;  %v1064_v35 = vpack.c.bf16 %v59_v31, %v58_v30  ;;  %v775_v9 = vld [vmem:[%s1152_s5 + $0x18] sm:$0xff]   ;;  %v776_v10 = vld [vmem:[%s1152_s5 + $0x20] sm:$0xff]   ;;  %v777_v11 = vld [vmem:[%s1152_s5 + $0x28] sm:$0xff]  }
   0xd   :  { %853 = vmatpush3.bf16.msra.mxu1 %v963_v22  ;;  %v778_v13 = vld [vmem:[%s1152_s5 + $0x30] sm:$0xff]   ;;  %v779_v14 = vld [vmem:[%s1152_s5 + $0x38] sm:$0xff]   ;;  %vm365_vm3 = vcmp.ne.s32.totalorder %v363_v16, 0  ;;  %v364_v23 = vadd.s32 8, %v363_v16 }
   0xe   :  { %v91_v37 = vshrl.u32 %v62_v33, 16  ;;  %v94_v38 = vshll.u32 %v62_v33, 16  ;;  %854 = vmatprep.subr.bf16.mxu1 %v965_v29  ;;  %v99_v39 = vshrl.u32 %v1064_v35, 16  ;;  %v102_v44 = vshll.u32 %v1064_v35, 16 }
   0xf   :  { %835 = vmatpush3.bf16.msra.mxu0 %v954_v4  ;;  %v974_v4 = vld [vmem:[%s1148_s1 + $0x78] sm:$0xff]   ;;  %v703_v17 = vsel %vm365_vm3, 1.0, %v978_v12  ;;  %vm372_vm4 = vcmp.ne.s32.totalorder %v364_v23, 15 }
  0x10   :  { %836 = vmatprep.subr.bf16.mxu0 %v955_v8  ;;  %v93_v42 = vrot.slane %v91_v37, 7  ;;  %v101_v43 = vrot.slane %v99_v39, 7  ;;  %v248_v47 = vrot.slane %v94_v38, 1  ;;  %v253_v48 = vrot.slane %v102_v44, 1 }
  0x11   :  { %855 = vmatpush3.bf16.msra.mxu1 %v965_v29 }
  0x12   :  { %v96_v45 = vor.u32 %v94_v38, %v93_v42  ;;  %856 = vmatprep.subr.bf16.mxu1 %v967_v36  ;;  %v104_v50 = vor.u32 %v102_v44, %v101_v43  ;;  %v249_v51 = vor.u32 %v248_v47, %v91_v37  ;;  %v257_v61 = vor.u32 %v253_v48, %v99_v39 }
  0x13   :  { %837 = vmatpush3.bf16.msra.mxu0 %v955_v8  ;;  %v774_v8 = vld [vmem:[%s1152_s5 + $0x10] sm:$0xff]  }
  0x14   :  { %838 = vmatprep.subr.bf16.mxu0 %v956_v26  ;;  %v97_v49 = vsel %vm85_vm0, %v89_v41, %v96_v45  ;;  %v254_v54 = vsel %vm242_vm1, %v249_v51, %v253_v48  ;;  %v105_v56 = vsel %vm85_vm0, %v93_v42, %v104_v50  ;;  %v262_v0 = vsel %vm242_vm1, %v257_v61, %v261_v62 }
  0x15   :  { %844 = vmatprep.mubr.bf16.mxu0 %v97_v49  ;;  %857 = vmatpush3.bf16.msra.mxu1 %v967_v36 }
  0x16   :  { %858 = vmatprep.subr.bf16.mxu1 %v969_v46  ;;  %864 = vmatprep.mubr.bf16.mxu1 %v254_v54 }
  0x17   :  { %839 = vmatpush3.bf16.msra.mxu0 %v956_v26  ;;  %v704_v26 = vsel %vm372_vm4, 1.0, %v978_v12 }
  0x18   :  { %840 = vmatprep.subr.bf16.mxu0 %v957_v32 }
  0x19   :  { %859 = vmatpush3.bf16.msra.mxu1 %v969_v46 }
  0x1a   :  { %860 = vmatprep.subr.bf16.mxu1 %v971_v53 }
  0x1b   :  { %841 = vmatpush3.bf16.msra.mxu0 %v957_v32 }
  0x1c   :  { %842 = vmatprep.subr.bf16.mxu0 %v958_v40 }
  0x1d   :  { %861 = vmatpush3.bf16.msra.mxu1 %v971_v53 }
  0x1e   :  { %862 = vmatprep.subr.bf16.mxu1 %v973_v59 }
  0x1f   :  { %843 = vmatpush3.bf16.msra.mxu0 %v958_v40  ;;  %v713_v40 = vld [vmem:[%s1153_s2] ss:$0 sm:$0xff] }
  0x20   :  { %868 = vmatprep.subr.bf16.mxu0 %v960_v52 }
  0x21   :  { %863 = vmatpush3.bf16.msra.mxu1 %v973_v59 }
  0x22   :  { %845 = vmatmul.mubr.bf16.vlgmr.msra.gmra.mrb[0].mxu0 %v105_v56  ;;  %923 = vmatprep.subr.bf16.mxu1 %v976_v5 }
  0x23   :  { %869 = vmatpush3.bf16.msra.mxu0 %v960_v52  ;;  %884 = vmatprep.mubr.bf16.mxu0 %v62_v33 }
  0x24   :  { %870 = vmatprep.subr.bf16.mxu0 %v962_v57  ;;  %865 = vmatmul.mubr.bf16.vlgmr.msra.gmra.mrb[0].mxu1 %v262_v0 }
  0x25   :  { %925 = vmatpush3.bf16.msra.mxu1 %v731_v6  ;;  %920 = vmatprep.mubr.msk.f32.mxu1 %vm977_vm2, %v978_v12 }
  0x26   :  { %926 = vmatprep.subr.bf16.mxu1 %v976_v5 }
  0x27   :  { %871 = vmatpush3.bf16.msra.mxu0 %v962_v57 }
  0x28   :  { %872 = vmatprep.subr.bf16.mxu0 %v964_v60 }
  0x29   :  { %928 = vmatpush3.bf16.msra.mxu1 %v773_v7 }
  0x2a   :  { %929 = vmatprep.subr.bf16.mxu1 %v976_v5 }
  0x2b   :  { %873 = vmatpush3.bf16.msra.mxu0 %v964_v60 }
  0x2c   :  { %874 = vmatprep.subr.bf16.mxu0 %v966_v63 }
  0x2d   :  { %931 = vmatpush3.bf16.msra.mxu1 %v774_v8 }
  0x2e   :  { %932 = vmatprep.subr.bf16.mxu1 %v976_v5 }
  0x2f   :  { %875 = vmatpush3.bf16.msra.mxu0 %v966_v63 }
  0x30   :  { %876 = vmatprep.subr.bf16.mxu0 %v968_v1 }
  0x31   :  { %934 = vmatpush3.bf16.msra.mxu1 %v775_v9 }
  0x32   :  { %935 = vmatprep.subr.bf16.mxu1 %v976_v5 }
  0x33   :  { %877 = vmatpush3.bf16.msra.mxu0 %v968_v1 }
  0x34   :  { %878 = vmatprep.subr.bf16.mxu0 %v970_v2 }
  0x35   :  { %937 = vmatpush3.bf16.msra.mxu1 %v776_v10 }
  0x36   :  { %938 = vmatprep.subr.bf16.mxu1 %v976_v5 }
  0x37   :  { %879 = vmatpush3.bf16.msra.mxu0 %v970_v2 }
  0x38   :  { %880 = vmatprep.subr.bf16.mxu0 %v972_v3 }
  0x39   :  { %940 = vmatpush3.bf16.msra.mxu1 %v777_v11 }
  0x3a   :  { %941 = vmatprep.subr.bf16.mxu1 %v976_v5 }
  0x3b   :  { %881 = vmatpush3.bf16.msra.mxu0 %v972_v3 }
  0x3c   :  { %882 = vmatprep.subr.bf16.mxu0 %v974_v4 }
  0x3d   :  { %943 = vmatpush3.bf16.msra.mxu1 %v778_v13 }
  0x3e   :  { %944 = vmatprep.subr.bf16.mxu1 %v976_v5 }
  0x3f   :  { %883 = vmatpush3.bf16.msra.mxu0 %v974_v4 }
  0x41   :  { %946 = vmatpush3.bf16.msra.mxu1 %v779_v14 }
  0x42   :  { %885 = vmatmul.mubr.bf16.vlgmr.msra.gmra.mrb[4].mxu0 %v1064_v35 }
  0xf5   :  { %v846_v18 = vpop.f32.mrb[0].mxu0 }
  0xf6   :  { %v379_v19 = vmul.f32 %v846_v18, %v703_v17  ;;  %v190_v20 = vpop.f32.mrb[1].mxu0 }
  0xf7   :  { %v377_v21 = vmul.f32 %v703_v17, %v190_v20  ;;  %v847_v22 = vpop.f32.mrb[2].mxu0  ;;  %v866_v25 = vpop.f32.mrb[0].mxu1 }
  0xf8   :  { %v193_v24 = vpop.f32.mrb[3].mxu0  ;;  %v347_v27 = vpop.f32.mrb[1].mxu1 }
  0xf9   :  { %v867_v28 = vpop.f32.mrb[2].mxu1 }
  0xfa   :  { %v481_v29 = vmul.f32 %v867_v28, %v704_v26  ;;  %v350_v30 = vpop.f32.mrb[3].mxu1 }
  0xfb   :  { %v479_v31 = vmul.f32 %v704_v26, %v350_v30 }
 0x115   :  { %v886_v32 = vpop.f32.mrb[4].mxu0 }
 0x116   :  { %v472_v33 = vadd.f32 %v886_v32, %v379_v19  ;;  %v463_v34 = vpop.f32.mrb[5].mxu0 }
 0x117   :  { %v464_v35 = vadd.f32 %v463_v34, %v377_v21  ;;  %v887_v36 = vpop.f32.mrb[6].mxu0 }
 0x118   :  { %v484_v37 = vadd.f32 %v866_v25, %v472_v33  ;;  %v475_v38 = vadd.f32 %v887_v36, %v847_v22  ;;  %v466_v39 = vpop.f32.mrb[7].mxu0 }
 0x119   :  { %v482_v41 = vadd.f32 %v464_v35, %v347_v27  ;;  %v467_v42 = vadd.f32 %v466_v39, %v193_v24 }
 0x11a   :  { %v485_v43 = vadd.f32 %v481_v29, %v475_v38  ;;  %v623_v45 = vadd.f32 %v713_v40, %v484_v37  ;;  %v497_v53 = vmul.f32 %v484_v37, %v484_v37 }
 0x11b   :  { %v483_v44 = vadd.f32 %v479_v31, %v467_v42  ;;  %v495_v46 = vmul.f32 %v482_v41, %v482_v41  ;;  %v621_v48 = vadd.f32 %v713_v40, %v482_v41 }
 0x11c   :  { %v624_v47 = vadd.f32 %v713_v40, %v485_v43  ;;  %v498_v57 = vmul.f32 %v485_v43, %v485_v43 }
 0x11d   :  { %v486_v49 = vadd.f32 %v483_v44, %v482_v41  ;;  %v496_v50 = vmul.f32 %v483_v44, %v483_v44  ;;  %v622_v51 = vadd.f32 %v713_v40, %v483_v44 }
 0x11e   :  { %v770_v52 = vpack.c.bf16 %v624_v47, %v623_v45 }
 0x11f   :  { %v487_v54 = vadd.f32 %v486_v49, %v484_v37  ;;  %v499_v55 = vadd.f32 %v496_v50, %v495_v46  ;;  %v765_v56 = vpack.c.bf16 %v622_v51, %v621_v48 }
 0x120   :  { %780 = vst [vmem:[%s1154_s6 + $0x8] sm:$0xff] %v770_v52  }
 0x121   :  { %v488_v58 = vadd.f32 %v487_v54, %v485_v43  ;;  %v500_v59 = vadd.f32 %v499_v55, %v497_v53  ;;  %766 = vst [vmem:[%s1154_s6] sm:$0xff] %v765_v56  }
 0x123   :  { %v489_v60 = vrot.slane %v488_v58, 4  ;;  %v501_v61 = vadd.f32 %v500_v59, %v498_v57 }
 0x125   :  { %v490_v62 = vadd.f32 %v489_v60, %v488_v58  ;;  %v502_v63 = vrot.slane %v501_v61, 4 }
 0x127   :  { %v491_v0 = vrot.slane %v490_v62, 2  ;;  %v503_v1 = vadd.f32 %v502_v63, %v501_v61 }
 0x129   :  { %v492_v2 = vadd.f32 %v491_v0, %v490_v62  ;;  %v504_v3 = vrot.slane %v503_v1, 2 }
 0x12b   :  { %v493_v4 = vrot.slane %v492_v2, 1  ;;  %v505_v5 = vadd.f32 %v504_v3, %v503_v1 }
 0x12d   :  { %v506_v6 = vrot.slane %v505_v5, 1  ;;  %v494_v7 = vadd.f32 %v493_v4, %v492_v2 }
 0x12f   :  { %v507_v8 = vadd.f32 %v506_v6, %v505_v5 }
 0x131   :  { %v509_v9 = vsel %vm508_vm5, %v494_v7, %v507_v8 }
 0x132   :  { %921 = vmatmul.mubr.f32.vlgmr.msra.gmra.mrb[4].mxu1 %v509_v9 }
 0x205   :  { %v608_v10 = vpop.f32.mrb[4].mxu1 }
 0x206   :  { %613 = vst.msk [vmem:[%s1155_s7] sm:$0x3] %vm612_vm6, %v608_v10  ;;  %v922_v11 = vpop.f32.mrb[5].mxu1 }

</bundles_post_ra>
